<compile_context>
chip_gen: v5e
topology: v5e:2x2
jax: 0.10.0
libtpu: 0.0.40
codegen_flags: <defaults>
</compile_context>

<pallas_src>
from functools import partial

import jax
import jax.numpy as jnp
from jax.experimental import pallas as pl
from jax.experimental.pallas import tpu as pltpu


def _round_up(n: int, m: int) -> int:
    return ((n + m - 1) // m) * m


def _num_tensorcores() -> int:
    """Best-effort count of TensorCores on the local device (v7x has 2, v5e/v6e 1)."""
    try:
        dev = jax.devices()[0]
        n = int(getattr(dev, "num_cores", 1) or 1)
        return max(1, min(n, 8))
    except Exception:
        return 1


def _pick_batch_tile(B: int, n_splits: int, max_tile_b: int = 8192) -> int:
    """Largest sensible batch tile: 1 grid step on single-TC parts, `n_splits`
    even steps on multi-TC parts (when the batch is big enough to split)."""
    if n_splits > 1 and B >= 16:
        tb = _round_up(pl.cdiv(B, n_splits), 8)
    else:
        tb = max(8, (B // 8) * 8)          # single tile covering the whole batch
    return min(tb, max_tile_b)


def _mlp_kernel(x_ref, w1_ref, b1_ref, w2_ref, b2_ref, o_ref):
    # x arrives as f32 straight from HBM (1x traffic); cast to bf16 in-kernel.
    x = x_ref[...].astype(jnp.bfloat16)    # (TB, inp)        bf16
    w1 = w1_ref[...]                        # (inp, hidden)    bf16 (resident)
    b1 = b1_ref[...]                        # (1, hidden)      f32  (resident)
    w2 = w2_ref[...]                        # (hidden, OUT_PAD) bf16 (resident)
    b2 = b2_ref[...]                        # (1, OUT_PAD)     f32  (resident)

    # Layer 1: Linear + ReLU (bf16 MXU matmul, f32 accumulate; elementwise in f32).
    h = jnp.dot(x, w1, preferred_element_type=jnp.float32)
    h = jnp.maximum(h + b1, 0.0)

    # Layer 2: Linear + Sigmoid.
    y = jnp.dot(h.astype(jnp.bfloat16), w2, preferred_element_type=jnp.float32) + b2
    # sigmoid(y) = 0.5 * tanh(0.5 * y) + 0.5  -> one EUP op per element.
    o_ref[...] = (0.5 * jnp.tanh(0.5 * y) + 0.5).astype(o_ref.dtype)


def prepare_params(w1, b1, w2, b2):
    """One-time parameter prep (hoisted out of the per-call forward):
    pad the output dim to a lane-dense multiple of 128 and cast matmul operands to bf16.

    w1: (inp, hidden)  (torch weight transposed),  b1: (hidden,)
    w2: (hidden, out)  (torch weight transposed),  b2: (out,)
    """
    inp, hidden = w1.shape
    _, out = w2.shape
    out_pad = _round_up(out, 128)

    w1b = jnp.asarray(w1, jnp.float32).astype(jnp.bfloat16)
    b1f = jnp.asarray(b1, jnp.float32).reshape(1, hidden)
    w2p = (jnp.zeros((hidden, out_pad), jnp.bfloat16)
           .at[:, :out].set(jnp.asarray(w2, jnp.float32).astype(jnp.bfloat16)))
    b2p = (jnp.zeros((1, out_pad), jnp.float32)
           .at[:, :out].set(jnp.asarray(b2, jnp.float32).reshape(1, out)))
    return w1b, b1f, w2p, b2p


@partial(jax.jit, static_argnames=("out",))
def net_forward(x, w1b, b1f, w2p, b2p, *, out):
    """Forward pass of `Net`. x: (B, inp) float32 -> (B, out) float32."""
    B, inp = x.shape
    hidden = w1b.shape[1]
    out_pad = w2p.shape[1]

    tb = _pick_batch_tile(B, _num_tensorcores())
    grid = (pl.cdiv(B, tb),)

    flops = 2 * B * (inp * hidden + hidden * out_pad)
    bytes_accessed = (B * inp * 4 + B * out_pad * 4
                      + inp * hidden * 2 + hidden * out_pad * 2
                      + hidden * 4 + out_pad * 4)

    y_pad = pl.pallas_call(
        _mlp_kernel,
        out_shape=jax.ShapeDtypeStruct((B, out_pad), jnp.float32),
        grid_spec=pltpu.PrefetchScalarGridSpec(
            num_scalar_prefetch=0,
            grid=grid,
            in_specs=[
                pl.BlockSpec((tb, inp), lambda i: (i, 0)),          # x: batch-tiled, f32
                pl.BlockSpec((inp, hidden), lambda i: (0, 0)),      # w1: resident bf16
                pl.BlockSpec((1, hidden), lambda i: (0, 0)),        # b1: resident f32
                pl.BlockSpec((hidden, out_pad), lambda i: (0, 0)),  # w2: resident bf16 (padded)
                pl.BlockSpec((1, out_pad), lambda i: (0, 0)),       # b2: resident f32 (padded)
            ],
            out_specs=pl.BlockSpec((tb, out_pad), lambda i: (i, 0)),
        ),
        compiler_params=pltpu.CompilerParams(
            dimension_semantics=("parallel",),   # batch axis shards across v7x's 2 TCs
        ),
        cost_estimate=pl.CostEstimate(
            flops=flops,
            transcendentals=B * out_pad,
            bytes_accessed=bytes_accessed,
        ),
    )(x, w1b, b1f, w2p, b2p)

    return y_pad[:, :out]


def init_params(key, inp, hidden, out):
    """Deterministic init mirroring nn.Linear's U(-1/sqrt(fan_in), 1/sqrt(fan_in))."""
    k1, k2, k3, k4 = jax.random.split(key, 4)
    lim1 = 1.0 / jnp.sqrt(inp)
    lim2 = 1.0 / jnp.sqrt(hidden)
    # stored as (in, out) == torch weight (out, in) transposed
    w1 = jax.random.uniform(k1, (inp, hidden), jnp.float32, -lim1, lim1)
    b1 = jax.random.uniform(k2, (hidden,), jnp.float32, -lim1, lim1)
    w2 = jax.random.uniform(k3, (hidden, out), jnp.float32, -lim2, lim2)
    b2 = jax.random.uniform(k4, (out,), jnp.float32, -lim2, lim2)
    return w1, b1, w2, b2


def _reference(x, w1, b1, w2, b2):
    """Plain-JAX reference mirroring the kernel's bf16 matmul inputs / f32 accumulation."""
    h = jnp.dot(x.astype(jnp.bfloat16), w1.astype(jnp.bfloat16),
                preferred_element_type=jnp.float32) + b1.reshape(1, -1)
    h = jnp.maximum(h, 0.0)
    y = jnp.dot(h.astype(jnp.bfloat16), w2.astype(jnp.bfloat16),
                preferred_element_type=jnp.float32) + b2.reshape(1, -1)
    return jax.nn.sigmoid(y)


if __name__ == "__main__":
    # fizzbuzz-style sizes: inp=16 (binary encoding), hidden=32, out=4 classes
    inp, hidden, out = 16, 32, 4

    key = jax.random.PRNGKey(0)
    kx, kp, kx2 = jax.random.split(key, 3)
    w1, b1, w2, b2 = init_params(kp, inp, hidden, out)

    # One-time parameter prep (padding + bf16 casts), hoisted out of the forward.
    params = prepare_params(w1, b1, w2, b2)

    # 1) Small batch: single grid step, single small tile.
    batch = 8
    x = jax.random.normal(kx, (batch, inp), dtype=jnp.float32)
    y = jax.block_until_ready(net_forward(x, *params, out=out))
    y_ref = _reference(x, w1, b1, w2, b2)
    assert y.shape == (batch, out)
    assert jnp.allclose(y, y_ref, atol=5e-3, rtol=5e-3)

    # 2) Larger batch exercising the big-tile path (1 step on v5e/v6e, 2 on v7x).
    batch2 = 1000
    x2 = jax.random.normal(kx2, (batch2, inp), dtype=jnp.float32)
    y2 = jax.block_until_ready(net_forward(x2, *params, out=out))
    y2_ref = _reference(x2, w1, b1, w2, b2)
    assert y2.shape == (batch2, out)
    assert jnp.allclose(y2, y2_ref, atol=5e-3, rtol=5e-3)

    print("KERNEL_OK")
</pallas_src>

<mosaic_0001>
module attributes {stable_mosaic.version = 11 : i64} {
  func.func @_mlp_kernel(%arg0: i32, %arg1: memref<8x16xf32, #tpu.memory_space<vmem>>, %arg2: memref<16x32xbf16, #tpu.memory_space<vmem>>, %arg3: memref<1x32xf32, #tpu.memory_space<vmem>>, %arg4: memref<32x128xbf16, #tpu.memory_space<vmem>>, %arg5: memref<1x128xf32, #tpu.memory_space<vmem>>, %arg6: memref<8x128xf32, #tpu.memory_space<vmem>>) attributes {dimension_semantics = [#tpu.dimension_semantics<parallel>], iteration_bounds = array<i64: 1>, scalar_prefetch = 0 : i64, scratch_operands = 0 : i64, tpu.core_type = #tpu.core_type<tc>, window_params = [{transform_indices = @transform_0, window_bounds = array<i64: 8, 16>}, {pipeline_mode = #tpu.pipeline_mode<synchronous>, transform_indices = @transform_1, window_bounds = array<i64: 16, 32>}, {pipeline_mode = #tpu.pipeline_mode<synchronous>, transform_indices = @transform_2, window_bounds = array<i64: 1, 32>}, {pipeline_mode = #tpu.pipeline_mode<synchronous>, transform_indices = @transform_3, window_bounds = array<i64: 32, 128>}, {pipeline_mode = #tpu.pipeline_mode<synchronous>, transform_indices = @transform_4, window_bounds = array<i64: 1, 128>}, {transform_indices = @transform_5, window_bounds = array<i64: 8, 128>}]} {
    %c0 = arith.constant 0 : index
    %c0_0 = arith.constant 0 : index
    %0 = vector.load %arg1[%c0, %c0_0] : memref<8x16xf32, #tpu.memory_space<vmem>>, vector<8x16xf32>
    %1 = arith.truncf %0 : vector<8x16xf32> to vector<8x16xbf16>
    %c0_1 = arith.constant 0 : index
    %c0_2 = arith.constant 0 : index
    %2 = vector.load %arg2[%c0_1, %c0_2] : memref<16x32xbf16, #tpu.memory_space<vmem>>, vector<16x32xbf16>
    %c0_3 = arith.constant 0 : index
    %c0_4 = arith.constant 0 : index
    %3 = vector.load %arg3[%c0_3, %c0_4] : memref<1x32xf32, #tpu.memory_space<vmem>>, vector<1x32xf32>
    %c0_5 = arith.constant 0 : index
    %c0_6 = arith.constant 0 : index
    %4 = vector.load %arg4[%c0_5, %c0_6] : memref<32x128xbf16, #tpu.memory_space<vmem>>, vector<32x128xbf16>
    %c0_7 = arith.constant 0 : index
    %c0_8 = arith.constant 0 : index
    %5 = vector.load %arg5[%c0_7, %c0_8] : memref<1x128xf32, #tpu.memory_space<vmem>>, vector<1x128xf32>
    %cst = arith.constant dense<0.000000e+00> : vector<8x32xf32>
    %6 = tpu.matmul %1, %2, %cst {dimension_numbers = #tpu.dot_dimension_numbers<[1], [0], [0], [1], [0, 0, 1, 1], [], []>} : vector<8x16xbf16>, vector<16x32xbf16>, vector<8x32xf32> -> vector<8x32xf32>
    %7 = vector.broadcast %3 : vector<1x32xf32> to vector<8x32xf32>
    %8 = arith.addf %6, %7 : vector<8x32xf32>
    %cst_9 = arith.constant 0.000000e+00 : f32
    %9 = vector.broadcast %cst_9 : f32 to vector<8x32xf32>
    %10 = arith.maximumf %8, %9 : vector<8x32xf32>
    %11 = arith.truncf %10 : vector<8x32xf32> to vector<8x32xbf16>
    %cst_10 = arith.constant dense<0.000000e+00> : vector<8x128xf32>
    %12 = tpu.matmul %11, %4, %cst_10 {dimension_numbers = #tpu.dot_dimension_numbers<[1], [0], [0], [1], [0, 0, 1, 1], [], []>} : vector<8x32xbf16>, vector<32x128xbf16>, vector<8x128xf32> -> vector<8x128xf32>
    %13 = vector.broadcast %5 : vector<1x128xf32> to vector<8x128xf32>
    %14 = arith.addf %12, %13 : vector<8x128xf32>
    %cst_11 = arith.constant 5.000000e-01 : f32
    %15 = vector.broadcast %cst_11 : f32 to vector<8x128xf32>
    %16 = arith.mulf %15, %14 : vector<8x128xf32>
    %17 = math.tanh %16 : vector<8x128xf32>
    %cst_12 = arith.constant 5.000000e-01 : f32
    %18 = vector.broadcast %cst_12 : f32 to vector<8x128xf32>
    %19 = arith.mulf %18, %17 : vector<8x128xf32>
    %cst_13 = arith.constant 5.000000e-01 : f32
    %20 = vector.broadcast %cst_13 : f32 to vector<8x128xf32>
    %21 = arith.addf %19, %20 : vector<8x128xf32>
    %c0_14 = arith.constant 0 : index
    %c0_15 = arith.constant 0 : index
    %22 = vector.load %arg6[%c0_14, %c0_15] : memref<8x128xf32, #tpu.memory_space<vmem>>, vector<8x128xf32>
    tpu.vector_store %arg6[%c0_14, %c0_15], %21 {strides = array<i32>} : memref<8x128xf32, #tpu.memory_space<vmem>>, vector<8x128xf32>,
    return
  }
  func.func @transform_0(%arg0: i32) -> (i32, i32) {
    %c0_i32 = arith.constant 0 : i32
    %c0_i32_0 = arith.constant 0 : i32
    return %arg0, %c0_i32 : i32, i32
  }
  func.func @transform_1(%arg0: i32) -> (i32, i32) {
    %c0_i32 = arith.constant 0 : i32
    %c0_i32_0 = arith.constant 0 : i32
    %c0_i32_1 = arith.constant 0 : i32
    return %c0_i32, %c0_i32_0 : i32, i32
  }
  func.func @transform_2(%arg0: i32) -> (i32, i32) {
    %c0_i32 = arith.constant 0 : i32
    %c0_i32_0 = arith.constant 0 : i32
    %c0_i32_1 = arith.constant 0 : i32
    return %c0_i32, %c0_i32_0 : i32, i32
  }
  func.func @transform_3(%arg0: i32) -> (i32, i32) {
    %c0_i32 = arith.constant 0 : i32
    %c0_i32_0 = arith.constant 0 : i32
    %c0_i32_1 = arith.constant 0 : i32
    return %c0_i32, %c0_i32_0 : i32, i32
  }
  func.func @transform_4(%arg0: i32) -> (i32, i32) {
    %c0_i32 = arith.constant 0 : i32
    %c0_i32_0 = arith.constant 0 : i32
    %c0_i32_1 = arith.constant 0 : i32
    return %c0_i32, %c0_i32_0 : i32, i32
  }
  func.func @transform_5(%arg0: i32) -> (i32, i32) {
    %c0_i32 = arith.constant 0 : i32
    %c0_i32_0 = arith.constant 0 : i32
    return %arg0, %c0_i32 : i32, i32
  }
}

</mosaic_0001>

<bundles_post_ra>
// kernel: net_forward.1
= control target key start
LH: loop header
LB: loop body
LE: loop exit
PB: predicated region body
PF: predicated region fallthrough
CT: control target
= control target key end

     0   :  { %10 = vsyncpa [#allocation3], 0  ;;  %s302_s0 = inlined_call_operand.hbm [shape: f32[8,16], index: 0, kind: input, shape index: {}]   ;;  %s303_s1 = inlined_call_operand.hbm [shape: bf16[16,32], index: 1, kind: input, shape index: {}]   ;;  %s304_s2 = inlined_call_operand.vmem [shape: f32[1,32], index: 2, kind: input, shape index: {}]   ;;  %s305_s3 = inlined_call_operand.hbm [shape: bf16[32,128], index: 3, kind: input, shape index: {}]   ;;  %s306_s4 = inlined_call_operand.vmem [shape: f32[1,128], index: 4, kind: input, shape index: {}]   ;;  %s307_s5 = inlined_call_operand.vmem [shape: f32[8,128], index: 5, kind: output, shape index: {}]  }
   0x1   :  { %11 = vsyncpa [#allocation5], 0  ;;  %s27_s20 = sshll.u32 %s303_s1, 4  ;;  %s249_s21 = smov [#allocation4]   ;;  %s28_s20 = int_to_ptr.hbm [resolvable:$true] %s27_s20 }
   0x2   :  { %s29_s22 = sshll.u32 %s249_s21, 4  ;;  %s17_s25 = sshll.u32 %s302_s0, 4  ;;  %s30_s22 = int_to_ptr.vmem [resolvable:$true] %s29_s22  ;;  %s18_s25 = int_to_ptr.hbm [resolvable:$true] %s17_s25 }
   0x3   :  { %s250_s26 = smov 64   ;;  %s251_s27 = smov 4  }
   0x4   :  { %35 = dma.hbm_to_vmem [thread:$0]  %s28_s20, 128, %s30_s22, [#allocation5], %s250_s26, %s250_s26, %s251_s27  }
   0x5   :  { %s252_s28 = smov [#allocation2]   ;;  %s42_s7 = sshll.u32 %s305_s3, 4  ;;  %s43_s7 = int_to_ptr.hbm [resolvable:$true] %s42_s7 }
   0x6   :  { %s19_s29 = sshll.u32 %s252_s28, 4  ;;  %s253_s1 = smov [#allocation6]   ;;  %s20_s29 = int_to_ptr.vmem [resolvable:$true] %s19_s29 }
   0x7   :  { %22 = dma.hbm_to_vmem [thread:$0]  %s18_s25, 128, %s20_s29, [#allocation3]  }
   0x8   :  { %s44_s8 = sshll.u32 %s253_s1, 4  ;;  %s45_s8 = int_to_ptr.vmem [resolvable:$true] %s44_s8 }
   0x9   :  { %50 = dma.hbm_to_vmem [thread:$0]  %s43_s7, 256, %s45_s8, [#allocation5], %s250_s26, %s250_s26, %s251_s27  }
   0xa   :  { %245 = dma.done.wait [#allocation3], 128  }
   0xb   :  { %246 = vsyncadd [#allocation3], 4294967168 }
   0xc   :  { %247 = dma.done.wait [#allocation5], 384  }
   0xd   :  { %248 = vsyncadd [#allocation5], 4294966912  ;;  %v161_v0 = vld [vmem:[#allocation4] sm:$0xff]  ;;  %v66_v1 = vld [vmem:[#allocation2] sm:$0xff]  ;;  %vm85_vm0 = vcmask 130048   ;;  %vm119_vm1 = vcmask 261120  }
   0xe   :  { %v67_v2 = vpack.c.bf16 %v66_v1, %v66_v1  ;;  %96 = vmatpush.bf16.msra.mxu0 %v161_v0  ;;  %v163_v3 = vld [vmem:[#allocation6 + $0x8] sm:$0xff]  ;;  %v162_v4 = vld [vmem:[#allocation6] sm:$0xff]  ;;  %v169_v5 = vld [vmem:[%s304_s2] ss:$0 sm:$0xff] }
   0xf   :  { %129 = vmatpush.bf16.msra.mxu1 %v163_v3  ;;  %v170_v11 = vld [vmem:[%s306_s4] ss:$0 sm:$0xff] }
  0x11   :  { %151 = vmatmul.msk.bf16.vlgmr.msra.gmra.mxu0 %vm85_vm0, %v67_v2 }
  0x13   :  { %130 = vmatpush.bf16.msra.mxu1 %v162_v4 }
  0x8e   :  { %v98_v6 = vpop.f32.mrf.mxu0 }
  0x8f   :  { %v99_v7 = vadd.f32 %v169_v5, %v98_v6 }
  0x91   :  { %v102_v8 = vmax.f32 %v99_v7, 0.0 }
  0x93   :  { %v103_v9 = vpack.c.bf16 %v102_v8, %v102_v8 }
  0x95   :  { %160 = vmatmul.msk.bf16.vlgmr.msra.gmra.mxu1 %vm119_vm1, %v103_v9 }
  0x96   :  { %v100_v10 = vpop.f32.mrf.mxu0 }
 0x112   :  { %v132_v12 = vpop.f32.mrf.mxu1 }
 0x113   :  { %v133_v13 = vadd.f32 %v170_v11, %v132_v12 }
 0x115   :  { %v136_v14 = vmul.f32 0.5, %v133_v13 }
 0x117   :  { %171 = vtanh.f32 %v136_v14 }
 0x11a   :  { %v134_v15 = vpop.f32.mrf.mxu1 }
 0x11d   :  { %v172_v16 = vpop.eup %171 }
 0x11e   :  { %v138_v17 = vmul.f32 0.5, %v172_v16 }
 0x120   :  { %v139_v18 = vadd.f32 0.5, %v138_v17 }
 0x122   :  { %140 = vst [vmem:[%s307_s5] sm:$0xff] %v139_v18 }
 0x123   :  { %145 = vsyncpa [#allocation3], 1 }
 0x124   :  { %146 = vsyncpa [#allocation5], 1 }

</bundles_post_ra>
